<compile_context>
chip_gen: v7x
topology: tpu7x:2x2x1
jax: 0.10.0
libtpu: 0.0.40
codegen_flags: <defaults>
</compile_context>

<pallas_src>
import jax
import jax.numpy as jnp
import numpy as np
from jax.experimental import pallas as pl
from jax.experimental.pallas import tpu as pltpu
from jax.scipy.linalg import block_diag


# ---------------------------------------------------------------------------
# In-kernel fused-ensemble MLP pieces
# ---------------------------------------------------------------------------
def _mlp_tail(h, wb_refs):
    """Apply [ReLU -> Linear] for each (W, b) pair (block-diag / mean-folded ensemble)."""
    n_lin = len(wb_refs) // 2
    for i in range(n_lin):
        w = wb_refs[2 * i][...]
        b = wb_refs[2 * i + 1][...]
        h = jnp.maximum(h, 0.0)
        h = jnp.dot(h.astype(w.dtype), w, preferred_element_type=jnp.float32) + b
    return h


def site_kernel(x_ref, w0_ref, b0_ref, *rest):
    """Ensemble of site-energy MLPs, all M models fused into one set of matmuls."""
    out_ref = rest[-1]
    wb = rest[:-1]
    w0 = w0_ref[...]
    h = jnp.dot(x_ref[...].astype(w0.dtype), w0,
                preferred_element_type=jnp.float32) + b0_ref[...]
    out_ref[...] = _mlp_tail(h, wb).astype(out_ref.dtype)


def make_interaction_kernel(cutoff, pair_cols):
    """Fused ensemble interaction MLP with in-kernel Gaussian RBF + cosine cutoff.

    The single row stream is [x[e0] | x[e1] | d]; the first-layer weights are
    split into a shared pair part (concat over models) plus a per-model RBF
    part (block-diagonal):  h0 = xpair @ W0_pair + emb @ W0_rbf + b0.
    """
    inv_rc = 1.0 / cutoff

    def kernel(row_ref, offs_ref, coeff_ref, w0p_ref, w0r_ref, b0_ref, *rest):
        out_ref = rest[-1]
        wb = rest[:-1]

        row = row_ref[...]                               # (rt, 2*in + 1)
        xpair = row[:, :pair_cols]                       # (rt, 2*in)
        d = row[:, pair_cols:pair_cols + 1]              # (rt, 1)

        # Gaussian RBF expansion for ALL models at once: (rt, M*n_rbf).
        emb = jnp.exp(coeff_ref[...] * (d - offs_ref[...]) ** 2)
        # Cosine cutoff (evaluated then masked -> no NaN risk).
        fc = 0.5 * (jnp.cos(jnp.pi * inv_rc * d) + 1.0)
        fc = jnp.where(d < cutoff, fc, 0.0)
        emb = emb * fc

        w0p = w0p_ref[...]
        w0r = w0r_ref[...]
        h = jnp.dot(xpair.astype(w0p.dtype), w0p, preferred_element_type=jnp.float32)
        h = h + jnp.dot(emb.astype(w0r.dtype), w0r, preferred_element_type=jnp.float32)
        h = h + b0_ref[...]
        out_ref[...] = _mlp_tail(h, wb).astype(out_ref.dtype)

    return kernel


# ---------------------------------------------------------------------------
# Wrapper: single pallas_call, "parallel" row-tiling grid, weights resident
# ---------------------------------------------------------------------------
def _round_up(x, m):
    return ((x + m - 1) // m) * m


def _row_tile(n_rows, max_tile):
    if n_rows <= 8:
        return n_rows  # single full-extent block (full-dim exemption from the 8-row rule)
    # >= 2 blocks so both v7x TensorCores get a share of the parallel grid axis.
    half = _round_up(pl.cdiv(n_rows, 2), 8)
    return max(8, min(max_tile, half))


def _fused_call(kernel, row_arg, const_args, out_cols, *,
                flops_per_row=0, trans_per_row=0, max_tile=1024):
    n_rows = row_arg.shape[0]
    rt = _row_tile(n_rows, max_tile)
    grid = (pl.cdiv(n_rows, rt),)   # ragged last block handled by Pallas; no jnp.pad

    in_specs = [pl.BlockSpec((rt, row_arg.shape[1]), lambda r: (r, 0))]
    in_specs += [pl.BlockSpec(a.shape, lambda r: (0, 0)) for a in const_args]

    weight_bytes = sum(int(a.size) * a.dtype.itemsize for a in const_args)
    bytes_accessed = (int(row_arg.size) * row_arg.dtype.itemsize
                      + n_rows * out_cols * 4 + weight_bytes)
    cost = pl.CostEstimate(flops=flops_per_row * n_rows,
                           transcendentals=trans_per_row * n_rows,
                           bytes_accessed=bytes_accessed)

    return pl.pallas_call(
        kernel,
        out_shape=jax.ShapeDtypeStruct((n_rows, out_cols), jnp.float32),
        grid=grid,
        in_specs=in_specs,
        out_specs=pl.BlockSpec((rt, out_cols), lambda r: (r, 0)),
        compiler_params=pltpu.CompilerParams(
            dimension_semantics=("parallel",),
            vmem_limit_bytes=48 * 1024 * 1024),
        cost_estimate=cost,
    )(row_arg, *const_args)


def ensemble_site(x, site_packed, *, max_tile=1024):
    weights = site_packed[0::2]
    flops_per_row = 2 * sum(int(w.shape[0]) * int(w.shape[1]) for w in weights)
    # Ensemble mean is folded into the final packed layer -> output IS the mean.
    return _fused_call(site_kernel, x, list(site_packed),
                       int(site_packed[-1].shape[1]),
                       flops_per_row=flops_per_row, max_tile=max_tile)   # (N, 1)


def ensemble_interaction(x_row, offs_flat, coeff_flat, int_packed, pair_cols,
                         cutoff, *, max_tile=1024):
    kernel = make_interaction_kernel(cutoff, pair_cols)
    const_args = [offs_flat, coeff_flat] + list(int_packed)
    weights = [int_packed[0], int_packed[1]] + list(int_packed[3::2])
    flops_per_row = 2 * sum(int(w.shape[0]) * int(w.shape[1]) for w in weights)
    trans_per_row = int(offs_flat.shape[1]) + 1          # exps + cosine cutoff
    return _fused_call(kernel, x_row, const_args, int(int_packed[-1].shape[1]),
                       flops_per_row=flops_per_row, trans_per_row=trans_per_row,
                       max_tile=max_tile)                 # (E, 1)


# ---------------------------------------------------------------------------
# Ensemble weight packing (one-time, outside the kernel)
# ---------------------------------------------------------------------------
def pack_mlp(Ws, bs, split_first=None, dtype=jnp.float32):
    """Pack per-model MLP weights into fused ensemble weights.

    Ws: list over layers of stacked (M, in_l, out_l); bs: list of (M, 1, out_l).
    Layer 0 input is shared -> weights concatenated along the output axis.  If
    split_first=(a, b), layer 0 is split into a shared part (first `a` input
    rows, concatenated) and a per-model part (last `b` rows, block-diagonal) --
    used for the per-model RBF features.  Hidden layers are block-diagonal.
    The FINAL layer folds the ensemble mean:
        mean_m(h_m @ W_m + b_m) == h_blocks @ concat_m(W_m / M) + mean_m(b_m)
    so the kernel output is already the ensemble mean (out_cols == 1).

    dtype=jnp.bfloat16 packs MXU-native operands (f32 accumulation is kept via
    preferred_element_type); biases always stay f32.
    """
    M = Ws[0].shape[0]
    n_layers = len(Ws)
    packed = []

    W0, b0 = Ws[0], bs[0]
    if split_first is None:
        packed.append(jnp.concatenate([W0[m] for m in range(M)], axis=1).astype(dtype))
    else:
        a, _ = split_first
        packed.append(jnp.concatenate([W0[m, :a, :] for m in range(M)], axis=1).astype(dtype))
        packed.append(block_diag(*[W0[m, a:, :] for m in range(M)]).astype(dtype))
    packed.append(jnp.concatenate([b0[m] for m in range(M)], axis=1).astype(jnp.float32))

    for layer in range(1, n_layers):
        Wl, bl = Ws[layer], bs[layer]
        if layer == n_layers - 1:
            packed.append((jnp.concatenate([Wl[m] for m in range(M)], axis=0) / M).astype(dtype))
            packed.append(jnp.mean(bl, axis=0).astype(jnp.float32))
        else:
            packed.append(block_diag(*[Wl[m] for m in range(M)]).astype(dtype))
            packed.append(jnp.concatenate([bl[m] for m in range(M)], axis=1).astype(jnp.float32))
    return packed


# ---------------------------------------------------------------------------
# Deterministic parameter construction (BatchNorm eval-mode folded into linears)
# ---------------------------------------------------------------------------
def init_params(key, num_models, input_size, hidden_layers, hidden_size, n_rbf, cutoff):
    def fold_bn(W, b, gamma, beta, mean, var, eps=1e-5):
        scale = gamma / jnp.sqrt(var + eps)
        return W * scale[None, :], (b - mean) * scale + beta

    site_dims = [input_size] + [hidden_size] * hidden_layers + [1]
    int_dims = [2 * input_size + n_rbf] + [hidden_size] * hidden_layers + [1]

    def init_mlp(key, dims):
        Ws, bs = [], []
        for i in range(len(dims) - 1):
            key, k1, k2, k3, k4, k5, k6 = jax.random.split(key, 7)
            fan = dims[i]
            W = jax.random.normal(k1, (fan, dims[i + 1]), jnp.float32) / jnp.sqrt(fan)
            b = 0.01 * jax.random.normal(k2, (dims[i + 1],), jnp.float32)
            if i < len(dims) - 2:  # hidden layer -> has BatchNorm (folded, eval mode)
                gamma = 1.0 + 0.1 * jax.random.normal(k3, (dims[i + 1],), jnp.float32)
                beta = 0.05 * jax.random.normal(k4, (dims[i + 1],), jnp.float32)
                mean = 0.05 * jax.random.normal(k5, (dims[i + 1],), jnp.float32)
                var = 1.0 + 0.1 * jax.random.uniform(k6, (dims[i + 1],), jnp.float32)
                W, b = fold_bn(W, b, gamma, beta, mean, var)
            Ws.append(W)
            bs.append(b.reshape(1, -1))
        return key, Ws, bs

    site_W_pm, site_b_pm, int_W_pm, int_b_pm = [], [], [], []
    offs_list, widths_list = [], []
    base = jnp.linspace(0.0, cutoff, n_rbf)
    base_width = cutoff / (n_rbf - 1)
    for _ in range(num_models):
        key, Ws, bs = init_mlp(key, site_dims)
        site_W_pm.append(Ws); site_b_pm.append(bs)
        key, Ws, bs = init_mlp(key, int_dims)
        int_W_pm.append(Ws); int_b_pm.append(bs)
        key, k1, k2 = jax.random.split(key, 3)
        offs_list.append(base + 0.05 * jax.random.normal(k1, (n_rbf,), jnp.float32))
        widths_list.append(base_width * (1.0 + 0.1 * jax.random.uniform(k2, (n_rbf,), jnp.float32)))

    def stack(per_model):
        n_layers = len(per_model[0])
        return [jnp.stack([per_model[m][l] for m in range(num_models)])
                for l in range(n_layers)]

    return dict(
        site_Ws=stack(site_W_pm), site_bs=stack(site_b_pm),
        int_Ws=stack(int_W_pm), int_bs=stack(int_b_pm),
        rbf_offs=jnp.stack(offs_list).reshape(num_models, 1, n_rbf),
        rbf_widths=jnp.stack(widths_list).reshape(num_models, 1, n_rbf),
    )


# ---------------------------------------------------------------------------
# Pure-JAX reference (mirrors the PyTorch forward semantics, per-model loop)
# ---------------------------------------------------------------------------
def reference(x, e, d, p, cutoff):
    M = p["site_Ws"][0].shape[0]

    def mlp(h, Ws, bs, m):
        for i in range(len(Ws)):
            h = h @ Ws[i][m] + bs[i][m]
            if i < len(Ws) - 1:
                h = jnp.maximum(h, 0.0)
        return h

    e_site = jnp.mean(jnp.stack([mlp(x, p["site_Ws"], p["site_bs"], m)
                                 for m in range(M)]), axis=0)

    dm = d.reshape(-1, 1)
    fc = jnp.where(dm < cutoff, 0.5 * (jnp.cos(jnp.pi * dm / cutoff) + 1.0), 0.0)
    e_ints = []
    for m in range(M):
        emb = jnp.exp(-0.5 / (p["rbf_widths"][m] ** 2) * (dm - p["rbf_offs"][m]) ** 2) * fc
        x_int = jnp.concatenate([x[e[0]], x[e[1]], emb], axis=1)
        e_ints.append(mlp(x_int, p["int_Ws"], p["int_bs"], m))
    e_int = jnp.mean(jnp.stack(e_ints), axis=0)
    return e_site, e_int


# ---------------------------------------------------------------------------
if __name__ == "__main__":
    num_nns = 8
    input_size = 32
    hidden_layers = 2
    hidden_size = 64
    n_rbf = 6
    cutoff = 6.0
    N, E = 16, 32   # N atoms/sites, E edges

    key = jax.random.PRNGKey(0)
    key, kx, ke, kd, kp = jax.random.split(key, 5)
    x = jax.random.normal(kx, (N, input_size), jnp.float32)
    e = jax.random.randint(ke, (2, E), 0, N, jnp.int32)
    d = jax.random.uniform(kd, (E,), jnp.float32, minval=0.5, maxval=cutoff * 1.2)

    params = init_params(kp, num_nns, input_size, hidden_layers, hidden_size,
                         n_rbf, cutoff)

    offs_flat = params["rbf_offs"].reshape(1, -1)                       # (1, M*n_rbf)
    coeff_flat = (-0.5 / (params["rbf_widths"] ** 2)).reshape(1, -1)    # (1, M*n_rbf)

    # Edge-index gather stays in plain JAX; d is appended as the last column so
    # the kernel sees ONE lane-dense row stream (no (rows,1) padded d input).
    # TODO(synk): at production E, move the gather in-kernel via scalar-prefetch
    #             row indices to avoid materializing x_row in HBM.
    x_row = jnp.concatenate([x[e[0]], x[e[1]], d.reshape(E, 1)], axis=1)  # (E, 2*in+1)

    ref_site, ref_int = reference(x, e, d, params, cutoff)

    # f32 packing: strict correctness check.  bf16 packing: MXU-native perf path,
    # loose check (bf16 weight rounding ~0.4% relative).
    for dtype, rtol, atol in ((jnp.float32, 1e-3, 1e-4), (jnp.bfloat16, 1e-1, 1e-1)):
        site_packed = pack_mlp(params["site_Ws"], params["site_bs"], dtype=dtype)
        int_packed = pack_mlp(params["int_Ws"], params["int_bs"],
                              split_first=(2 * input_size, n_rbf), dtype=dtype)

        e_site = ensemble_site(x, site_packed)
        e_int = ensemble_interaction(x_row, offs_flat, coeff_flat, int_packed,
                                     2 * input_size, cutoff)
        jax.block_until_ready((e_site, e_int))

        np.testing.assert_allclose(np.asarray(e_site), np.asarray(ref_site),
                                   rtol=rtol, atol=atol)
        np.testing.assert_allclose(np.asarray(e_int), np.asarray(ref_int),
                                   rtol=rtol, atol=atol)

    print("KERNEL_OK")
</pallas_src>

<mosaic_0001>
module attributes {stable_mosaic.version = 11 : i64} {
  func.func @site_kernel(%arg0: i32, %arg1: memref<8x32xf32, #tpu.memory_space<vmem>>, %arg2: memref<32x512xf32, #tpu.memory_space<vmem>>, %arg3: memref<1x512xf32, #tpu.memory_space<vmem>>, %arg4: memref<512x512xf32, #tpu.memory_space<vmem>>, %arg5: memref<1x512xf32, #tpu.memory_space<vmem>>, %arg6: memref<512x1xf32, #tpu.memory_space<vmem>>, %arg7: memref<1x1xf32, #tpu.memory_space<vmem>>, %arg8: memref<8x1xf32, #tpu.memory_space<vmem>>) attributes {dimension_semantics = [#tpu.dimension_semantics<parallel>], iteration_bounds = array<i64: 2>, scalar_prefetch = 0 : i64, scratch_operands = 0 : i64, tpu.core_type = #tpu.core_type<tc>, window_params = [{transform_indices = @transform_0, window_bounds = array<i64: 8, 32>}, {pipeline_mode = #tpu.pipeline_mode<synchronous>, transform_indices = @transform_1, window_bounds = array<i64: 32, 512>}, {pipeline_mode = #tpu.pipeline_mode<synchronous>, transform_indices = @transform_2, window_bounds = array<i64: 1, 512>}, {pipeline_mode = #tpu.pipeline_mode<synchronous>, transform_indices = @transform_3, window_bounds = array<i64: 512, 512>}, {pipeline_mode = #tpu.pipeline_mode<synchronous>, transform_indices = @transform_4, window_bounds = array<i64: 1, 512>}, {pipeline_mode = #tpu.pipeline_mode<synchronous>, transform_indices = @transform_5, window_bounds = array<i64: 512, 1>}, {pipeline_mode = #tpu.pipeline_mode<synchronous>, transform_indices = @transform_6, window_bounds = array<i64: 1, 1>}, {transform_indices = @transform_7, window_bounds = array<i64: 8, 1>}]} {
    %c0 = arith.constant 0 : index
    %c0_0 = arith.constant 0 : index
    %0 = vector.load %arg2[%c0, %c0_0] : memref<32x512xf32, #tpu.memory_space<vmem>>, vector<32x512xf32>
    %c0_1 = arith.constant 0 : index
    %c0_2 = arith.constant 0 : index
    %1 = vector.load %arg1[%c0_1, %c0_2] : memref<8x32xf32, #tpu.memory_space<vmem>>, vector<8x32xf32>
    %cst = arith.constant dense<0.000000e+00> : vector<8x512xf32>
    %2 = tpu.matmul %1, %0, %cst {dimension_numbers = #tpu.dot_dimension_numbers<[1], [0], [0], [1], [0, 0, 1, 1], [], []>} : vector<8x32xf32>, vector<32x512xf32>, vector<8x512xf32> -> vector<8x512xf32>
    %c0_3 = arith.constant 0 : index
    %c0_4 = arith.constant 0 : index
    %3 = vector.load %arg3[%c0_3, %c0_4] : memref<1x512xf32, #tpu.memory_space<vmem>>, vector<1x512xf32>
    %4 = vector.broadcast %3 : vector<1x512xf32> to vector<8x512xf32>
    %5 = arith.addf %2, %4 : vector<8x512xf32>
    %c0_5 = arith.constant 0 : index
    %c0_6 = arith.constant 0 : index
    %6 = vector.load %arg4[%c0_5, %c0_6] : memref<512x512xf32, #tpu.memory_space<vmem>>, vector<512x512xf32>
    %c0_7 = arith.constant 0 : index
    %c0_8 = arith.constant 0 : index
    %7 = vector.load %arg5[%c0_7, %c0_8] : memref<1x512xf32, #tpu.memory_space<vmem>>, vector<1x512xf32>
    %cst_9 = arith.constant 0.000000e+00 : f32
    %8 = vector.broadcast %cst_9 : f32 to vector<8x512xf32>
    %9 = arith.maximumf %5, %8 : vector<8x512xf32>
    %cst_10 = arith.constant dense<0.000000e+00> : vector<8x512xf32>
    %10 = tpu.matmul %9, %6, %cst_10 {dimension_numbers = #tpu.dot_dimension_numbers<[1], [0], [0], [1], [0, 0, 1, 1], [], []>} : vector<8x512xf32>, vector<512x512xf32>, vector<8x512xf32> -> vector<8x512xf32>
    %11 = vector.broadcast %7 : vector<1x512xf32> to vector<8x512xf32>
    %12 = arith.addf %10, %11 : vector<8x512xf32>
    %c0_11 = arith.constant 0 : index
    %c0_12 = arith.constant 0 : index
    %13 = vector.load %arg6[%c0_11, %c0_12] : memref<512x1xf32, #tpu.memory_space<vmem>>, vector<512x1xf32>
    %c0_13 = arith.constant 0 : index
    %c0_14 = arith.constant 0 : index
    %14 = vector.load %arg7[%c0_13, %c0_14] : memref<1x1xf32, #tpu.memory_space<vmem>>, vector<1x1xf32>
    %cst_15 = arith.constant 0.000000e+00 : f32
    %15 = vector.broadcast %cst_15 : f32 to vector<8x512xf32>
    %16 = arith.maximumf %12, %15 : vector<8x512xf32>
    %cst_16 = arith.constant dense<0.000000e+00> : vector<8x1xf32>
    %17 = tpu.matmul %16, %13, %cst_16 {dimension_numbers = #tpu.dot_dimension_numbers<[1], [0], [0], [1], [0, 0, 1, 1], [], []>} : vector<8x512xf32>, vector<512x1xf32>, vector<8x1xf32> -> vector<8x1xf32>
    %18 = vector.broadcast %14 : vector<1x1xf32> to vector<8x1xf32>
    %19 = arith.addf %17, %18 : vector<8x1xf32>
    %c0_17 = arith.constant 0 : index
    %c0_18 = arith.constant 0 : index
    %20 = vector.load %arg8[%c0_17, %c0_18] : memref<8x1xf32, #tpu.memory_space<vmem>>, vector<8x1xf32>
    tpu.vector_store %arg8[%c0_17, %c0_18], %19 {strides = array<i32>} : memref<8x1xf32, #tpu.memory_space<vmem>>, vector<8x1xf32>,
    return
  }
  func.func @transform_0(%arg0: i32) -> (i32, i32) {
    %c0_i32 = arith.constant 0 : i32
    %c0_i32_0 = arith.constant 0 : i32
    return %arg0, %c0_i32 : i32, i32
  }
  func.func @transform_1(%arg0: i32) -> (i32, i32) {
    %c0_i32 = arith.constant 0 : i32
    %c0_i32_0 = arith.constant 0 : i32
    %c0_i32_1 = arith.constant 0 : i32
    return %c0_i32, %c0_i32_0 : i32, i32
  }
  func.func @transform_2(%arg0: i32) -> (i32, i32) {
    %c0_i32 = arith.constant 0 : i32
    %c0_i32_0 = arith.constant 0 : i32
    %c0_i32_1 = arith.constant 0 : i32
    return %c0_i32, %c0_i32_0 : i32, i32
  }
  func.func @transform_3(%arg0: i32) -> (i32, i32) {
    %c0_i32 = arith.constant 0 : i32
    %c0_i32_0 = arith.constant 0 : i32
    %c0_i32_1 = arith.constant 0 : i32
    return %c0_i32, %c0_i32_0 : i32, i32
  }
  func.func @transform_4(%arg0: i32) -> (i32, i32) {
    %c0_i32 = arith.constant 0 : i32
    %c0_i32_0 = arith.constant 0 : i32
    %c0_i32_1 = arith.constant 0 : i32
    return %c0_i32, %c0_i32_0 : i32, i32
  }
  func.func @transform_5(%arg0: i32) -> (i32, i32) {
    %c0_i32 = arith.constant 0 : i32
    %c0_i32_0 = arith.constant 0 : i32
    %c0_i32_1 = arith.constant 0 : i32
    return %c0_i32, %c0_i32_0 : i32, i32
  }
  func.func @transform_6(%arg0: i32) -> (i32, i32) {
    %c0_i32 = arith.constant 0 : i32
    %c0_i32_0 = arith.constant 0 : i32
    %c0_i32_1 = arith.constant 0 : i32
    return %c0_i32, %c0_i32_0 : i32, i32
  }
  func.func @transform_7(%arg0: i32) -> (i32, i32) {
    %c0_i32 = arith.constant 0 : i32
    %c0_i32_0 = arith.constant 0 : i32
    return %arg0, %c0_i32 : i32, i32
  }
}

</mosaic_0001>

<bundles_post_ra>
// kernel: tpu_custom_call.1
= control target key start
LH: loop header
LB: loop body
LE: loop exit
PB: predicated region body
PF: predicated region fallthrough
CT: control target
= control target key end

     0   :  { %s2203_s0 = inlined_call_operand.vmem [shape: f32[16,32], index: 0, kind: input, shape index: {}]   ;;  %s2204_s1 = inlined_call_operand.vmem [shape: f32[32,512], index: 1, kind: input, shape index: {}]   ;;  %s2205_s2 = inlined_call_operand.vmem [shape: f32[1,512], index: 2, kind: input, shape index: {}]   ;;  %s2206_s3 = inlined_call_operand.hbm [shape: f32[512,512], index: 3, kind: input, shape index: {}]   ;;  %s2207_s4 = inlined_call_operand.vmem [shape: f32[1,512], index: 4, kind: input, shape index: {}]   ;;  %s2208_s5 = inlined_call_operand.vmem [shape: f32[512,1], index: 5, kind: input, shape index: {}]   ;;  %s2209_s6 = inlined_call_operand.<no memory space> [shape: f32[1,1], index: 6, kind: input, shape index: {}]   ;;  %s2210_s7 = inlined_call_operand.vmem [shape: f32[16,1], index: 7, kind: output, shape index: {}]  }
   0x1   :  { %v12_v0 = vstv %s2209_s6 }
   0x2   :  { %13 = vst [vmem:[#allocation2] sm:$0x1] %v12_v0 }
   0x3   :  { %14 = vsyncpa [#allocation4], 0  ;;  %s1861_s26 = smov 0  }
   0x4 LB: > { %s1867_s27 = sadd.s32 4294967295, %s1812_s26   ;;  %p1326_p0 = scmp.ge.s32.totalorder %s1812_s26, 1  ;;  %s1812_s26 = sphi %s1861_s26, %s20_s26  }
   0x5   : > { %p203_p1 = scmp.lt.s32.totalorder %s1812_s26, 3  ;;  %s1814_s28 = smov [#allocation3]  }
   0x6   : > { %s221_s6 = sshll.u32 %s1814_s28, 4  ;;  %p2211_p3 = scmp.eq.s32.totalorder %s1867_s27, 0  ;;  %s222_s6 = int_to_ptr.vmem [resolvable:$true] %s221_s6 }
   0x7   : > { %p1871_p2 = pnand %p1326_p0, %p203_p1  ;;  %s1774_s10 = scalar_lea.hbm %s2206_s3, 32768 }
   0x8   : > { %p1775_p6 = scmp.ne.s32.totalorder %s2206_s3, %s1774_s10  ;;  %p1781_p10 = scmp.lt.u32.totalorder %s1774_s10, %s2206_s3 }
   0x9   : > { %s2213_s29 = scalar_select %p1871_p2, 1, 0 }
   0xa   : > { %p1756_p4 = pneg %p1871_p2 }
   0xc   : > { %p1880_p5 = pnand %p2211_p3, %p1756_p4 }
   0xe   : > { %p1776_p7 = pneg %p1880_p5 }
  0x10   : > { %p1777_p8 = pnand %p1776_p7, %p1775_p6 }
  0x12   : > { %p1778_p9 = pneg %p1777_p8 }
  0x14   : > { %p1783_p11 = pnand %p1781_p10, %p1778_p9 }
  0x16   : > { %1786 = shalt.err (!%p1783_p11)
}
  0x17   : > { %s1787_s15 = scalar_lea.vmem %s222_s6, 32768  ;;  %p1795_p1 = scmp.lt.s32.totalorder %s222_s6, %s222_s6 }
  0x18   : > { %p1788_p12 = scmp.ne.s32.totalorder %s222_s6, %s1787_s15  ;;  %p1796_p4 = scmp.lt.s32.totalorder %s1787_s15, %s1787_s15 }
  0x1a   : > { %p1790_p13 = pnand %p1788_p12, %p1776_p7  ;;  %p1797_p3 = por %p1796_p4, %p1795_p1 }
  0x1c   : > { %p1791_p0 = pneg %p1790_p13 }
  0x1e   : > { %p1798_p2 = pnand %p1797_p3, %p1791_p0 }
  0x20   : > { %1801 = shalt.err (!%p1798_p2)
}
  0x21   : > { %s1815_s16 = smov 512   ;;  %s1816_s17 = smov 32  }
  0x22   : > { %1759 = dma.hbm_to_vmem [thread:$0]  (!%p1880_p5), %s2206_s3, 32768, %s222_s6, [#allocation4], %s1815_s16, %s1815_s16, %s1816_s17  }
  0x23   : > { %p2215_p6 = scmp.ne.s32.totalorder %s2213_s29, 0 }
  0x24   : > { %p2216_p8 = scmp.eq.s32.totalorder (!%p2215_p6), %s1867_s27, 0 }
  0x25   : > { %253 = sbr.rel (%p2215_p6) target bundleno = 777 (0x309), region = 48 }
  0x2c   : > { %1807 = dma.done.wait (%p2216_p8), [#allocation4], 32768   ;;  %p2217_p7 = pmov %p2216_p8 }
  0x2d   : > { %p283_p2 = scmp.lt.s32.totalorder %s1867_s27, 1  ;;  %v1817_v1 = vmov 0.0   ;;  %v292_v2 = vld [vmem:[%s2204_s1 + $0x8] sm:$0xff]  ;;  %v291_v4 = vld [vmem:[%s2204_s1] sm:$0xff]  ;;  %v294_v13 = vld [vmem:[%s2204_s1 + $0x18] sm:$0xff]  ;;  %vm330_vm0 = vcmask 261120  }
  0x2e   : > { %1809 = vsyncadd (%p2217_p7), [#allocation4], 4294934528  ;;  %398 = vmatprep.mubr.f32.mxu0 %v1817_v1  ;;  %469 = vmatprep.mubr.f32.mxu1 %v1817_v1  ;;  %v296_v3 = vld [vmem:[%s2204_s1 + $0x28] sm:$0xff]  ;;  %v295_v6 = vld [vmem:[%s2204_s1 + $0x20] sm:$0xff]  ;;  %vm1257_vm1 = vcmask 7168  }
  0x2f   : > { %s2219_s27 = smov (!%p283_p2, %s1867_s27), 1  ;;  %v1408_v5 = vpack.c.bf16 %v296_v3, %v292_v2  ;;  %v300_v7 = vld [vmem:[%s2204_s1 + $0x48] sm:$0xff]  ;;  %v1410_v9 = vpack.c.bf16 %v295_v6, %v291_v4  ;;  %v299_v11 = vld [vmem:[%s2204_s1 + $0x40] sm:$0xff]  ;;  %v298_v14 = vld [vmem:[%s2204_s1 + $0x38] sm:$0xff] }
  0x30   : > { %s1331_s28 = sshll.u32 %s2219_s27, 3  ;;  %v304_v8 = vld [vmem:[%s2204_s1 + $0x68] sm:$0xff]  ;;  %v303_v12 = vld [vmem:[%s2204_s1 + $0x60] sm:$0xff]  ;;  %v293_v15 = vld [vmem:[%s2204_s1 + $0x10] sm:$0xff]  ;;  %v1416_v17 = vpack.c.bf16 %v298_v14, %v294_v13 }
  0x31   : > { %v1412_v10 = vpack.c.bf16 %v304_v8, %v300_v7  ;;  %1409 = vmatprep.subr.bf16.mxu0 %v1408_v5  ;;  %s286_s17 = scalar_lea.vmem %s2203_s0, %s1331_s28  ;;  %v1414_v16 = vpack.c.bf16 %v303_v12, %v299_v11  ;;  %v297_v18 = vld [vmem:[%s2204_s1 + $0x30] sm:$0xff]  ;;  %v302_v19 = vld [vmem:[%s2204_s1 + $0x58] sm:$0xff]  ;;  %v476_v32 = vld [vmem:[#allocation3] sm:$0xff]  ;;  %s290_s21 = scalar_lea.vmem %s2210_s7, %s1331_s28 }
  0x32   : > { %1411 = vmatpush1.bf16.msra.mxu0 %v1410_v9  ;;  %v306_v20 = vld [vmem:[%s2204_s1 + $0x78] sm:$0xff]  ;;  %v1418_v21 = vpack.c.bf16 %v297_v18, %v293_v15  ;;  %v301_v23 = vld [vmem:[%s2204_s1 + $0x50] sm:$0xff]  ;;  %v307_v26 = vld [vmem:[%s286_s17] sm:$0xff]  ;;  %1417 = vmatprep.subr.bf16.mxu1 %v1416_v17 }
  0x33   : > { %1413 = vmatprep.subr.bf16.mxu0 %v1412_v10  ;;  %v1420_v22 = vpack.c.bf16 %v306_v20, %v302_v19  ;;  %v305_v24 = vld [vmem:[%s2204_s1 + $0x70] sm:$0xff]  ;;  %v479_v28 = vld [vmem:[#allocation3 + $0x18] sm:$0xff]  ;;  %v480_v33 = vld [vmem:[#allocation3 + $0x20] sm:$0xff] }
  0x34   : > { %v477_v25 = vld [vmem:[#allocation3 + $0x8] sm:$0xff]  ;;  %v483_v29 = vld [vmem:[#allocation3 + $0x38] sm:$0xff]  ;;  %1419 = vmatpush1.bf16.msra.mxu1 %v1418_v21  ;;  %v1422_v30 = vpack.c.bf16 %v305_v24, %v301_v23  ;;  %v478_v34 = vld [vmem:[#allocation3 + $0x10] sm:$0xff]  ;;  %v1426_v36 = vpack.c.bf16 %v480_v33, %v476_v32 }
  0x35   : > { %v481_v27 = vld [vmem:[#allocation3 + $0x28] sm:$0xff]  ;;  %1421 = vmatprep.subr.bf16.mxu1 %v1420_v22  ;;  %v1552_v35 = vpack.c.bf16 %v483_v29, %v479_v28  ;;  %v482_v37 = vld [vmem:[#allocation3 + $0x30] sm:$0xff]  ;;  %v487_v41 = vld [vmem:[#allocation3 + $0x58] sm:$0xff] }
  0x36   : > { %v1424_v31 = vpack.c.bf16 %v481_v27, %v477_v25  ;;  %1415 = vmatpush1.bf16.msra.mxu0 %v1414_v16  ;;  %v485_v38 = vld [vmem:[#allocation3 + $0x48] sm:$0xff]  ;;  %v491_v42 = vld [vmem:[#allocation3 + $0x78] sm:$0xff]  ;;  %v484_v43 = vld [vmem:[#allocation3 + $0x40] sm:$0xff]  ;;  %v1554_v45 = vpack.c.bf16 %v482_v37, %v478_v34 }
  0x37   : > { %v489_v39 = vld [vmem:[#allocation3 + $0x68] sm:$0xff]  ;;  %v488_v44 = vld [vmem:[#allocation3 + $0x60] sm:$0xff]  ;;  %v1556_v48 = vpack.c.bf16 %v491_v42, %v487_v41  ;;  %v486_v50 = vld [vmem:[#allocation3 + $0x50] sm:$0xff] }
  0x38   : > { %1425 = vmatprep.subr.bf16.mxu0 %v1424_v31  ;;  %v1428_v40 = vpack.c.bf16 %v489_v39, %v485_v38  ;;  %1423 = vmatpush1.bf16.msra.mxu1 %v1422_v30  ;;  %v493_v46 = vld [vmem:[#allocation3 + $0x88] sm:$0xff]  ;;  %v1430_v49 = vpack.c.bf16 %v488_v44, %v484_v43  ;;  %v490_v51 = vld [vmem:[#allocation3 + $0x70] sm:$0xff]  ;;  %v495_v52 = vld [vmem:[#allocation3 + $0x98] sm:$0xff] }
  0x39   : > { %1333 = vmatmul.mubr.msk.f32.vlgmr.msra.gmra.mrb[0].mxu0 %vm330_vm0, %v307_v26  ;;  %v497_v47 = vld [vmem:[#allocation3 + $0xa8] sm:$0xff]  ;;  %1553 = vmatprep.subr.bf16.mxu1 %v1552_v35  ;;  %v499_v54 = vld [vmem:[#allocation3 + $0xb8] sm:$0xff]  ;;  %v492_v55 = vld [vmem:[#allocation3 + $0x80] sm:$0xff]  ;;  %v1558_v59 = vpack.c.bf16 %v490_v51, %v486_v50 }
  0x3a   : > { %1427 = vmatpush1.bf16.msra.mxu0 %v1426_v36  ;;  %v1432_v53 = vpack.c.bf16 %v497_v47, %v493_v46  ;;  %v496_v56 = vld [vmem:[#allocation3 + $0xa0] sm:$0xff]  ;;  %v501_v57 = vld [vmem:[#allocation3 + $0xc8] sm:$0xff]  ;;  %v1560_v60 = vpack.c.bf16 %v499_v54, %v495_v52  ;;  %v494_v62 = vld [vmem:[#allocation3 + $0x90] sm:$0xff] }
  0x3b   : > { %1429 = vmatprep.subr.bf16.mxu0 %v1428_v40  ;;  %1334 = vmatmul.mubr.msk.f32.vlgmr.msra.gmra.mrb[0].mxu1 %vm330_vm0, %v307_v26  ;;  %v505_v58 = vld [vmem:[#allocation3 + $0xe8] sm:$0xff]  ;;  %v1434_v61 = vpack.c.bf16 %v496_v56, %v492_v55  ;;  %v498_v63 = vld [vmem:[#allocation3 + $0xb0] sm:$0xff]  ;;  %v503_v0 = vld [vmem:[#allocation3 + $0xd8] sm:$0xff] }
  0x3c   : > { %1555 = vmatpush1.bf16.msra.mxu1 %v1554_v45  ;;  %v1436_v1 = vpack.c.bf16 %v505_v58, %v501_v57  ;;  %v507_v2 = vld [vmem:[#allocation3 + $0xf8] sm:$0xff]  ;;  %v500_v3 = vld [vmem:[#allocation3 + $0xc0] sm:$0xff]  ;;  %v509_v5 = vld [vmem:[#allocation3 + $0x108] sm:$0xff]  ;;  %v1562_v7 = vpack.c.bf16 %v498_v63, %v494_v62 }
  0x3d   : > { %1557 = vmatprep.subr.bf16.mxu1 %v1556_v48  ;;  %v504_v4 = vld [vmem:[#allocation3 + $0xe0] sm:$0xff]  ;;  %v513_v6 = vld [vmem:[#allocation3 + $0x128] sm:$0xff]  ;;  %v1564_v8 = vpack.c.bf16 %v507_v2, %v503_v0  ;;  %v502_v10 = vld [vmem:[#allocation3 + $0xd0] sm:$0xff] }
  0x3e   : > { %1431 = vmatpush1.bf16.msra.mxu0 %v1430_v49  ;;  %v1438_v9 = vpack.c.bf16 %v504_v4, %v500_v3  ;;  %v506_v11 = vld [vmem:[#allocation3 + $0xf0] sm:$0xff]  ;;  %v511_v12 = vld [vmem:[#allocation3 + $0x118] sm:$0xff]  ;;  %v1440_v13 = vpack.c.bf16 %v513_v6, %v509_v5  ;;  %v508_v15 = vld [vmem:[#allocation3 + $0x100] sm:$0xff] }
  0x3f   : > { %1433 = vmatprep.subr.bf16.mxu0 %v1432_v53  ;;  %v515_v14 = vld [vmem:[#allocation3 + $0x138] sm:$0xff]  ;;  %v512_v16 = vld [vmem:[#allocation3 + $0x120] sm:$0xff]  ;;  %v517_v17 = vld [vmem:[#allocation3 + $0x148] sm:$0xff]  ;;  %v1566_v19 = vpack.c.bf16 %v506_v11, %v502_v10 }
  0x40   : > { %1559 = vmatpush1.bf16.msra.mxu1 %v1558_v59  ;;  %v521_v18 = vld [vmem:[#allocation3 + $0x168] sm:$0xff]  ;;  %v1568_v20 = vpack.c.bf16 %v515_v14, %v511_v12  ;;  %v1442_v21 = vpack.c.bf16 %v512_v16, %v508_v15  ;;  %v510_v22 = vld [vmem:[#allocation3 + $0x110] sm:$0xff]  ;;  %v519_v24 = vld [vmem:[#allocation3 + $0x158] sm:$0xff] }
  0x41   : > { %1561 = vmatprep.subr.bf16.mxu1 %v1560_v60  ;;  %v514_v23 = vld [vmem:[#allocation3 + $0x130] sm:$0xff]  ;;  %v1444_v25 = vpack.c.bf16 %v521_v18, %v517_v17  ;;  %v523_v26 = vld [vmem:[#allocation3 + $0x178] sm:$0xff]  ;;  %v516_v27 = vld [vmem:[#allocation3 + $0x140] sm:$0xff] }
  0x42   : > { %1435 = vmatpush1.bf16.msra.mxu0 %v1434_v61  ;;  %v520_v28 = vld [vmem:[#allocation3 + $0x160] sm:$0xff]  ;;  %v525_v29 = vld [vmem:[#allocation3 + $0x188] sm:$0xff]  ;;  %v1570_v31 = vpack.c.bf16 %v514_v23, %v510_v22  ;;  %v1572_v32 = vpack.c.bf16 %v523_v26, %v519_v24  ;;  %v518_v34 = vld [vmem:[#allocation3 + $0x150] sm:$0xff] }
  0x43   : > { %1437 = vmatprep.subr.bf16.mxu0 %v1436_v1  ;;  %v529_v30 = vld [vmem:[#allocation3 + $0x1a8] sm:$0xff]  ;;  %v1446_v33 = vpack.c.bf16 %v520_v28, %v516_v27  ;;  %v522_v35 = vld [vmem:[#allocation3 + $0x170] sm:$0xff]  ;;  %v527_v36 = vld [vmem:[#allocation3 + $0x198] sm:$0xff] }
  0x44   : > { %1563 = vmatpush1.bf16.msra.mxu1 %v1562_v7  ;;  %v1448_v37 = vpack.c.bf16 %v529_v30, %v525_v29  ;;  %v531_v38 = vld [vmem:[#allocation3 + $0x1b8] sm:$0xff]  ;;  %v524_v39 = vld [vmem:[#allocation3 + $0x180] sm:$0xff]  ;;  %v533_v41 = vld [vmem:[#allocation3 + $0x1c8] sm:$0xff]  ;;  %v1574_v43 = vpack.c.bf16 %v522_v35, %v518_v34 }
  0x45   : > { %1565 = vmatprep.subr.bf16.mxu1 %v1564_v8  ;;  %v528_v40 = vld [vmem:[#allocation3 + $0x1a0] sm:$0xff]  ;;  %v537_v42 = vld [vmem:[#allocation3 + $0x1e8] sm:$0xff]  ;;  %v1576_v44 = vpack.c.bf16 %v531_v38, %v527_v36  ;;  %v526_v46 = vld [vmem:[#allocation3 + $0x190] sm:$0xff] }
  0x46   : > { %1439 = vmatpush1.bf16.msra.mxu0 %v1438_v9  ;;  %v1450_v45 = vpack.c.bf16 %v528_v40, %v524_v39  ;;  %v530_v47 = vld [vmem:[#allocation3 + $0x1b0] sm:$0xff]  ;;  %v535_v48 = vld [vmem:[#allocation3 + $0x1d8] sm:$0xff]  ;;  %v1452_v49 = vpack.c.bf16 %v537_v42, %v533_v41  ;;  %v532_v51 = vld [vmem:[#allocation3 + $0x1c0] sm:$0xff] }
  0x47   : > { %1441 = vmatprep.subr.bf16.mxu0 %v1440_v13  ;;  %v539_v50 = vld [vmem:[#allocation3 + $0x1f8] sm:$0xff]  ;;  %v536_v52 = vld [vmem:[#allocation3 + $0x1e0] sm:$0xff]  ;;  %v541_v53 = vld [vmem:[#allocation3 + $0x208] sm:$0xff]  ;;  %v1578_v55 = vpack.c.bf16 %v530_v47, %v526_v46 }
  0x48   : > { %1567 = vmatpush1.bf16.msra.mxu1 %v1566_v19  ;;  %v545_v54 = vld [vmem:[#allocation3 + $0x228] sm:$0xff]  ;;  %v1580_v56 = vpack.c.bf16 %v539_v50, %v535_v48  ;;  %v1454_v57 = vpack.c.bf16 %v536_v52, %v532_v51  ;;  %v534_v58 = vld [vmem:[#allocation3 + $0x1d0] sm:$0xff]  ;;  %v543_v60 = vld [vmem:[#allocation3 + $0x218] sm:$0xff] }
  0x49   : > { %1569 = vmatprep.subr.bf16.mxu1 %v1568_v20  ;;  %v538_v59 = vld [vmem:[#allocation3 + $0x1f0] sm:$0xff]  ;;  %v1456_v61 = vpack.c.bf16 %v545_v54, %v541_v53  ;;  %v547_v62 = vld [vmem:[#allocation3 + $0x238] sm:$0xff]  ;;  %v540_v63 = vld [vmem:[#allocation3 + $0x200] sm:$0xff] }
  0x4a   : > { %1443 = vmatpush1.bf16.msra.mxu0 %v1442_v21  ;;  %v544_v0 = vld [vmem:[#allocation3 + $0x220] sm:$0xff]  ;;  %v549_v1 = vld [vmem:[#allocation3 + $0x248] sm:$0xff]  ;;  %v1582_v3 = vpack.c.bf16 %v538_v59, %v534_v58  ;;  %v1584_v4 = vpack.c.bf16 %v547_v62, %v543_v60  ;;  %v542_v6 = vld [vmem:[#allocation3 + $0x210] sm:$0xff] }
  0x4b   : > { %1445 = vmatprep.subr.bf16.mxu0 %v1444_v25  ;;  %v553_v2 = vld [vmem:[#allocation3 + $0x268] sm:$0xff]  ;;  %v1458_v5 = vpack.c.bf16 %v544_v0, %v540_v63  ;;  %v546_v7 = vld [vmem:[#allocation3 + $0x230] sm:$0xff]  ;;  %v551_v8 = vld [vmem:[#allocation3 + $0x258] sm:$0xff] }
  0x4c   : > { %1571 = vmatpush1.bf16.msra.mxu1 %v1570_v31  ;;  %v1460_v9 = vpack.c.bf16 %v553_v2, %v549_v1  ;;  %v555_v10 = vld [vmem:[#allocation3 + $0x278] sm:$0xff]  ;;  %v548_v11 = vld [vmem:[#allocation3 + $0x240] sm:$0xff]  ;;  %v557_v13 = vld [vmem:[#allocation3 + $0x288] sm:$0xff]  ;;  %v1586_v15 = vpack.c.bf16 %v546_v7, %v542_v6 }
  0x4d   : > { %1573 = vmatprep.subr.bf16.mxu1 %v1572_v32  ;;  %v552_v12 = vld [vmem:[#allocation3 + $0x260] sm:$0xff]  ;;  %v561_v14 = vld [vmem:[#allocation3 + $0x2a8] sm:$0xff]  ;;  %v1588_v16 = vpack.c.bf16 %v555_v10, %v551_v8  ;;  %v550_v18 = vld [vmem:[#allocation3 + $0x250] sm:$0xff] }
  0x4e   : > { %1447 = vmatpush1.bf16.msra.mxu0 %v1446_v33  ;;  %v1462_v17 = vpack.c.bf16 %v552_v12, %v548_v11  ;;  %v554_v19 = vld [vmem:[#allocation3 + $0x270] sm:$0xff]  ;;  %v559_v20 = vld [vmem:[#allocation3 + $0x298] sm:$0xff]  ;;  %v1464_v21 = vpack.c.bf16 %v561_v14, %v557_v13  ;;  %v556_v23 = vld [vmem:[#allocation3 + $0x280] sm:$0xff] }
  0x4f   : > { %1449 = vmatprep.subr.bf16.mxu0 %v1448_v37  ;;  %v563_v22 = vld [vmem:[#allocation3 + $0x2b8] sm:$0xff]  ;;  %v560_v24 = vld [vmem:[#allocation3 + $0x2a0] sm:$0xff]  ;;  %v565_v25 = vld [vmem:[#allocation3 + $0x2c8] sm:$0xff]  ;;  %v1590_v27 = vpack.c.bf16 %v554_v19, %v550_v18 }
  0x50   : > { %1575 = vmatpush1.bf16.msra.mxu1 %v1574_v43  ;;  %v569_v26 = vld [vmem:[#allocation3 + $0x2e8] sm:$0xff]  ;;  %v1592_v28 = vpack.c.bf16 %v563_v22, %v559_v20  ;;  %v1466_v29 = vpack.c.bf16 %v560_v24, %v556_v23  ;;  %v558_v30 = vld [vmem:[#allocation3 + $0x290] sm:$0xff]  ;;  %v567_v32 = vld [vmem:[#allocation3 + $0x2d8] sm:$0xff] }
  0x51   : > { %1577 = vmatprep.subr.bf16.mxu1 %v1576_v44  ;;  %v562_v31 = vld [vmem:[#allocation3 + $0x2b0] sm:$0xff]  ;;  %v1468_v33 = vpack.c.bf16 %v569_v26, %v565_v25  ;;  %v571_v34 = vld [vmem:[#allocation3 + $0x2f8] sm:$0xff]  ;;  %v564_v35 = vld [vmem:[#allocation3 + $0x2c0] sm:$0xff] }
  0x52   : > { %1451 = vmatpush1.bf16.msra.mxu0 %v1450_v45  ;;  %v568_v36 = vld [vmem:[#allocation3 + $0x2e0] sm:$0xff]  ;;  %v573_v37 = vld [vmem:[#allocation3 + $0x308] sm:$0xff]  ;;  %v1594_v39 = vpack.c.bf16 %v562_v31, %v558_v30  ;;  %v1596_v40 = vpack.c.bf16 %v571_v34, %v567_v32  ;;  %v566_v42 = vld [vmem:[#allocation3 + $0x2d0] sm:$0xff] }
  0x53   : > { %1453 = vmatprep.subr.bf16.mxu0 %v1452_v49  ;;  %v577_v38 = vld [vmem:[#allocation3 + $0x328] sm:$0xff]  ;;  %v1470_v41 = vpack.c.bf16 %v568_v36, %v564_v35  ;;  %v570_v43 = vld [vmem:[#allocation3 + $0x2f0] sm:$0xff]  ;;  %v575_v44 = vld [vmem:[#allocation3 + $0x318] sm:$0xff] }
  0x54   : > { %1579 = vmatpush1.bf16.msra.mxu1 %v1578_v55  ;;  %v1472_v45 = vpack.c.bf16 %v577_v38, %v573_v37  ;;  %v579_v46 = vld [vmem:[#allocation3 + $0x338] sm:$0xff]  ;;  %v572_v47 = vld [vmem:[#allocation3 + $0x300] sm:$0xff]  ;;  %v581_v49 = vld [vmem:[#allocation3 + $0x348] sm:$0xff]  ;;  %v1598_v51 = vpack.c.bf16 %v570_v43, %v566_v42 }
  0x55   : > { %1581 = vmatprep.subr.bf16.mxu1 %v1580_v56  ;;  %v576_v48 = vld [vmem:[#allocation3 + $0x320] sm:$0xff]  ;;  %v585_v50 = vld [vmem:[#allocation3 + $0x368] sm:$0xff]  ;;  %v1600_v52 = vpack.c.bf16 %v579_v46, %v575_v44  ;;  %v574_v54 = vld [vmem:[#allocation3 + $0x310] sm:$0xff] }
  0x56   : > { %1455 = vmatpush1.bf16.msra.mxu0 %v1454_v57  ;;  %v1474_v53 = vpack.c.bf16 %v576_v48, %v572_v47  ;;  %v578_v55 = vld [vmem:[#allocation3 + $0x330] sm:$0xff]  ;;  %v583_v56 = vld [vmem:[#allocation3 + $0x358] sm:$0xff]  ;;  %v1476_v57 = vpack.c.bf16 %v585_v50, %v581_v49  ;;  %v580_v59 = vld [vmem:[#allocation3 + $0x340] sm:$0xff] }
  0x57   : > { %1457 = vmatprep.subr.bf16.mxu0 %v1456_v61  ;;  %v587_v58 = vld [vmem:[#allocation3 + $0x378] sm:$0xff]  ;;  %v584_v60 = vld [vmem:[#allocation3 + $0x360] sm:$0xff]  ;;  %v589_v61 = vld [vmem:[#allocation3 + $0x388] sm:$0xff]  ;;  %v1602_v63 = vpack.c.bf16 %v578_v55, %v574_v54 }
  0x58   : > { %1583 = vmatpush1.bf16.msra.mxu1 %v1582_v3  ;;  %v593_v62 = vld [vmem:[#allocation3 + $0x3a8] sm:$0xff]  ;;  %v1604_v0 = vpack.c.bf16 %v587_v58, %v583_v56  ;;  %v1478_v1 = vpack.c.bf16 %v584_v60, %v580_v59  ;;  %v582_v2 = vld [vmem:[#allocation3 + $0x350] sm:$0xff]  ;;  %v595_v6 = vld [vmem:[#allocation3 + $0x3b8] sm:$0xff] }
  0x59   : > { %1585 = vmatprep.subr.bf16.mxu1 %v1584_v4  ;;  %v586_v3 = vld [vmem:[#allocation3 + $0x370] sm:$0xff]  ;;  %v591_v4 = vld [vmem:[#allocation3 + $0x398] sm:$0xff]  ;;  %v588_v7 = vld [vmem:[#allocation3 + $0x380] sm:$0xff] }
  0x5a   : > { %1459 = vmatpush1.bf16.msra.mxu0 %v1458_v5  ;;  %v1480_v5 = vpack.c.bf16 %v593_v62, %v589_v61  ;;  %v592_v8 = vld [vmem:[#allocation3 + $0x3a0] sm:$0xff]  ;;  %v1608_v10 = vpack.c.bf16 %v595_v6, %v591_v4  ;;  %v590_v12 = vld [vmem:[#allocation3 + $0x390] sm:$0xff]  ;;  %v603_v19 = vld [vmem:[#allocation3 + $0x3f8] sm:$0xff] }
  0x5b   : > { %1461 = vmatprep.subr.bf16.mxu0 %v1460_v9  ;;  %v1606_v9 = vpack.c.bf16 %v586_v3, %v582_v2  ;;  %v1482_v11 = vpack.c.bf16 %v592_v8, %v588_v7  ;;  %v594_v13 = vld [vmem:[#allocation3 + $0x3b0] sm:$0xff]  ;;  %v596_v20 = vld [vmem:[#allocation3 + $0x3c0] sm:$0xff]  ;;  %v611_v31 = vld [vmem:[#allocation3 + $0x438] sm:$0xff] }
  0x5c   : > { %1587 = vmatpush1.bf16.msra.mxu1 %v1586_v15  ;;  %v1610_v14 = vpack.c.bf16 %v594_v13, %v590_v12  ;;  %v597_v15 = vld [vmem:[#allocation3 + $0x3c8] sm:$0xff]  ;;  %v598_v24 = vld [vmem:[#allocation3 + $0x3d0] sm:$0xff]  ;;  %v1972_v36 = vld [vmem:[%s2205_s2] sm:$0xf] }
  0x5d   : > { %1589 = vmatprep.subr.bf16.mxu1 %v1588_v16  ;;  %v601_v16 = vld [vmem:[#allocation3 + $0x3e8] sm:$0xff]  ;;  %v602_v25 = vld [vmem:[#allocation3 + $0x3f0] sm:$0xff]  ;;  %v604_v42 = vld [vmem:[#allocation3 + $0x400] sm:$0xff] }
  0x5e   : > { %1463 = vmatpush1.bf16.msra.mxu0 %v1462_v17  ;;  %v599_v17 = vld [vmem:[#allocation3 + $0x3d8] sm:$0xff]  ;;  %v1484_v18 = vpack.c.bf16 %v601_v16, %v597_v15  ;;  %v1614_v26 = vpack.c.bf16 %v602_v25, %v598_v24  ;;  %v608_v43 = vld [vmem:[#allocation3 + $0x420] sm:$0xff]  ;;  %v606_v46 = vld [vmem:[#allocation3 + $0x410] sm:$0xff] }
  0x5f   : > { %1465 = vmatprep.subr.bf16.mxu0 %v1464_v21  ;;  %v600_v21 = vld [vmem:[#allocation3 + $0x3e0] sm:$0xff]  ;;  %v1612_v22 = vpack.c.bf16 %v603_v19, %v599_v17  ;;  %v610_v47 = vld [vmem:[#allocation3 + $0x430] sm:$0xff]  ;;  %v613_v48 = vld [vmem:[#allocation3 + $0x448] sm:$0xff]  ;;  %v1490_v56 = vpack.c.bf16 %v608_v43, %v604_v42 }
  0x60   : > { %1591 = vmatpush1.bf16.msra.mxu1 %v1590_v27  ;;  %v1486_v23 = vpack.c.bf16 %v600_v21, %v596_v20  ;;  %v605_v27 = vld [vmem:[#allocation3 + $0x408] sm:$0xff]  ;;  %v612_v58 = vld [vmem:[#allocation3 + $0x440] sm:$0xff]  ;;  %v627_v6 = vld [vmem:[#allocation3 + $0x4b8] sm:$0xff] }
  0x61   : > { %1593 = vmatprep.subr.bf16.mxu1 %v1592_v28  ;;  %v609_v28 = vld [vmem:[#allocation3 + $0x428] sm:$0xff]  ;;  %v616_v59 = vld [vmem:[#allocation3 + $0x460] sm:$0xff]  ;;  %v626_v15 = vld [vmem:[#allocation3 + $0x4b0] sm:$0xff] }
  0x62   : > { %1467 = vmatpush1.bf16.msra.mxu0 %v1466_v29  ;;  %v607_v29 = vld [vmem:[#allocation3 + $0x418] sm:$0xff]  ;;  %v1488_v30 = vpack.c.bf16 %v609_v28, %v605_v27  ;;  %v621_v2 = vld [vmem:[#allocation3 + $0x488] sm:$0xff]  ;;  %v1494_v8 = vpack.c.bf16 %v616_v59, %v612_v58  ;;  %v634_v27 = vld [vmem:[#allocation3 + $0x4f0] sm:$0xff] }
  0x63   : > { %1469 = vmatprep.subr.bf16.mxu0 %v1468_v33  ;;  %v1616_v32 = vpack.c.bf16 %v611_v31, %v607_v29  ;;  %v310_v33 = vlaneseq  ;;  %v625_v4 = vld [vmem:[#allocation3 + $0x4a8] sm:$0xff]  ;;  %v635_v19 = vld [vmem:[#allocation3 + $0x4f8] sm:$0xff]  ;;  %v638_v43 = vld [vmem:[#allocation3 + $0x510] sm:$0xff] }
  0x64   : > { %1595 = vmatpush1.bf16.msra.mxu1 %v1594_v39  ;;  %v1496_v12 = vpack.c.bf16 %v625_v4, %v621_v2  ;;  %v629_v16 = vld [vmem:[#allocation3 + $0x4c8] sm:$0xff]  ;;  %v643_v31 = vld [vmem:[#allocation3 + $0x538] sm:$0xff]  ;;  %v654_v4 = vld [vmem:[#allocation3 + $0x590] sm:$0xff] }
  0x65   : > { %1597 = vmatprep.subr.bf16.mxu1 %v1596_v40  ;;  %v1966_v34 = vshrl.u32 %v310_v33, 7  ;;  %v633_v17 = vld [vmem:[#allocation3 + $0x4e8] sm:$0xff] }
  0x66   : > { %1471 = vmatpush1.bf16.msra.mxu0 %v1470_v41  ;;  %v1500_v24 = vpack.c.bf16 %v633_v17, %v629_v16  ;;  %v637_v28 = vld [vmem:[#allocation3 + $0x508] sm:$0xff]  ;;  %v662_v16 = vld [vmem:[#allocation3 + $0x5d0] sm:$0xff] }
  0x67   : > { %1473 = vmatprep.subr.bf16.mxu0 %v1472_v45  ;;  %v312_v35 = vsub.s32 0, %v1966_v34  ;;  %v316_v37 = vsub.s32 1, %v1966_v34  ;;  %v324_v39 = vsub.s32 3, %v1966_v34  ;;  %v641_v29 = vld [vmem:[#allocation3 + $0x528] sm:$0xff]  ;;  %v666_v17 = vld [vmem:[#allocation3 + $0x5f0] sm:$0xff] }
  0x68   : > { %1599 = vmatpush1.bf16.msra.mxu1 %v1598_v51  ;;  %v617_v51 = vld [vmem:[#allocation3 + $0x468] sm:$0xff] }
  0x69   : > { %1601 = vmatprep.subr.bf16.mxu1 %v1600_v52  ;;  %v313_v38 = vrot.slane %v1972_v36, %v312_v35  ;;  %v317_v40 = vrot.slane %v1972_v36, %v316_v37  ;;  %v325_v49 = vrot.slane %v1972_v36, %v324_v39  ;;  %v615_v52 = vld [vmem:[#allocation3 + $0x458] sm:$0xff]  ;;  %v1492_v62 = vpack.c.bf16 %v617_v51, %v613_v48  ;;  %v644_v51 = vld [vmem:[#allocation3 + $0x540] sm:$0xff]  ;;  %v653_v58 = vld [vmem:[#allocation3 + $0x588] sm:$0xff] }
  0x6a   : > { %1475 = vmatpush1.bf16.msra.mxu0 %v1474_v53  ;;  %v619_v53 = vld [vmem:[#allocation3 + $0x478] sm:$0xff]  ;;  %v657_v59 = vld [vmem:[#allocation3 + $0x5a8] sm:$0xff] }
  0x6b   : > { %1477 = vmatprep.subr.bf16.mxu0 %v1476_v57  ;;  %v1618_v57 = vpack.c.bf16 %v610_v47, %v606_v46  ;;  %v649_v46 = vld [vmem:[#allocation3 + $0x568] sm:$0xff]  ;;  %v647_v47 = vld [vmem:[#allocation3 + $0x558] sm:$0xff]  ;;  %v1512_v2 = vpack.c.bf16 %v657_v59, %v653_v58  ;;  %v686_v58 = vld [vmem:[#allocation3 + $0x690] sm:$0xff] }
  0x6c   : > { %1603 = vmatpush1.bf16.msra.mxu1 %v1602_v63  ;;  %v1620_v63 = vpack.c.bf16 %v619_v53, %v615_v52  ;;  %v651_v48 = vld [vmem:[#allocation3 + $0x578] sm:$0xff]  ;;  %v648_v52 = vld [vmem:[#allocation3 + $0x560] sm:$0xff]  ;;  %v690_v59 = vld [vmem:[#allocation3 + $0x6b0] sm:$0xff] }
  0x6d   : > { %1605 = vmatprep.subr.bf16.mxu1 %v1604_v0  ;;  %v614_v0 = vld [vmem:[#allocation3 + $0x450] sm:$0xff] }
  0x6e   : > { %1479 = vmatpush1.bf16.msra.mxu0 %v1478_v1  ;;  %v618_v1 = vld [vmem:[#allocation3 + $0x470] sm:$0xff] }
  0x6f   : > { %1481 = vmatprep.subr.bf16.mxu0 %v1480_v5  ;;  %v623_v5 = vld [vmem:[#allocation3 + $0x498] sm:$0xff] }
  0x70   : > { %1607 = vmatpush1.bf16.msra.mxu1 %v1606_v9  ;;  %v1622_v9 = vpack.c.bf16 %v618_v1, %v614_v0  ;;  %v1624_v13 = vpack.c.bf16 %v627_v6, %v623_v5  ;;  %v652_v0 = vld [vmem:[#allocation3 + $0x580] sm:$0xff]  ;;  %v658_v5 = vld [vmem:[#allocation3 + $0x5b0] sm:$0xff]  ;;  %v661_v6 = vld [vmem:[#allocation3 + $0x5c8] sm:$0xff] }
  0x71   : > { %1609 = vmatprep.subr.bf16.mxu1 %v1608_v10  ;;  %v620_v10 = vld [vmem:[#allocation3 + $0x480] sm:$0xff] }
  0x72   : > { %1483 = vmatpush1.bf16.msra.mxu0 %v1482_v11  ;;  %v624_v11 = vld [vmem:[#allocation3 + $0x4a0] sm:$0xff] }
  0x73   : > { %1485 = vmatprep.subr.bf16.mxu0 %v1484_v18  ;;  %v631_v18 = vld [vmem:[#allocation3 + $0x4d8] sm:$0xff]  ;;  %v1498_v20 = vpack.c.bf16 %v624_v11, %v620_v10  ;;  %v656_v1 = vld [vmem:[#allocation3 + $0x5a0] sm:$0xff]  ;;  %v1642_v11 = vpack.c.bf16 %v658_v5, %v654_v4 }
  0x74   : > { %1611 = vmatpush1.bf16.msra.mxu1 %v1610_v14  ;;  %v622_v14 = vld [vmem:[#allocation3 + $0x490] sm:$0xff]  ;;  %v1628_v25 = vpack.c.bf16 %v635_v19, %v631_v18  ;;  %v1514_v10 = vpack.c.bf16 %v656_v1, %v652_v0  ;;  %v669_v18 = vld [vmem:[#allocation3 + $0x608] sm:$0xff]  ;;  %v1658_v1 = vpack.c.bf16 %v690_v59, %v686_v58  ;;  %v728_v58 = vld [vmem:[#allocation3 + $0x7e0] sm:$0xff] }
  0x75   : > { %1613 = vmatprep.subr.bf16.mxu1 %v1612_v22  ;;  %v1626_v21 = vpack.c.bf16 %v626_v15, %v622_v14  ;;  %v628_v22 = vld [vmem:[#allocation3 + $0x4c0] sm:$0xff]  ;;  %v673_v19 = vld [vmem:[#allocation3 + $0x628] sm:$0xff] }
  0x76   : > { %1487 = vmatpush1.bf16.msra.mxu0 %v1486_v23  ;;  %v632_v23 = vld [vmem:[#allocation3 + $0x4e0] sm:$0xff] }
  0x77   : > { %1489 = vmatprep.subr.bf16.mxu0 %v1488_v30  ;;  %v639_v30 = vld [vmem:[#allocation3 + $0x518] sm:$0xff] }
  0x78   : > { %1615 = vmatpush1.bf16.msra.mxu1 %v1614_v26  ;;  %v630_v26 = vld [vmem:[#allocation3 + $0x4d0] sm:$0xff]  ;;  %v1632_v42 = vpack.c.bf16 %v643_v31, %v639_v30  ;;  %v677_v30 = vld [vmem:[#allocation3 + $0x648] sm:$0xff] }
  0x79   : > { %1617 = vmatprep.subr.bf16.mxu1 %v1616_v32  ;;  %v1502_v32 = vpack.c.bf16 %v632_v23, %v628_v22  ;;  %v1630_v33 = vpack.c.bf16 %v634_v27, %v630_v26  ;;  %v1646_v23 = vpack.c.bf16 %v666_v17, %v662_v16  ;;  %v1520_v26 = vpack.c.bf16 %v673_v19, %v669_v18  ;;  %v681_v31 = vld [vmem:[#allocation3 + $0x668] sm:$0xff]  ;;  %v702_v18 = vld [vmem:[#allocation3 + $0x710] sm:$0xff] }
  0x7a   : > { %v706_v19 = vld [vmem:[#allocation3 + $0x730] sm:$0xff] }
 0x10c   : > { %v400_v41 = vpop.f32.mrb[0].mxu0 }
 0x10d   : > { %v401_v44 = vadd.f32 %v400_v41, %v313_v38  ;;  %v402_v45 = vpop.f32.mrb[1].mxu0  ;;  %v636_v38 = vld [vmem:[#allocation3 + $0x500] sm:$0xff]  ;;  %v1504_v41 = vpack.c.bf16 %v641_v29, %v637_v28  ;;  %v670_v28 = vld [vmem:[#allocation3 + $0x610] sm:$0xff] }
 0x10e   : > { %v403_v50 = vadd.f32 %v402_v45, %v317_v40  ;;  %v1985_v54 = vpop.f32.mrb[0].mxu1  ;;  %v640_v40 = vld [vmem:[#allocation3 + $0x520] sm:$0xff]  ;;  %v645_v45 = vld [vmem:[#allocation3 + $0x548] sm:$0xff]  ;;  %v674_v29 = vld [vmem:[#allocation3 + $0x630] sm:$0xff] }
 0x10f   : > { %v473_v60 = vpop.f32.mrb[1].mxu1  ;;  %v733_v61 = vmax.f32 %v401_v44, 0.0  ;;  %v642_v44 = vld [vmem:[#allocation3 + $0x530] sm:$0xff]  ;;  %v1508_v53 = vpack.c.bf16 %v649_v46, %v645_v45 }
 0x110   : > { %v734_v55 = vmax.f32 %v403_v50, 0.0  ;;  %v474_v3 = vadd.f32 %v473_v60, %v325_v49  ;;  %v1506_v49 = vpack.c.bf16 %v640_v40, %v636_v38  ;;  %v1634_v50 = vpack.c.bf16 %v642_v44, %v638_v43  ;;  %v655_v60 = vld [vmem:[#allocation3 + $0x598] sm:$0xff]  ;;  %v678_v45 = vld [vmem:[#allocation3 + $0x650] sm:$0xff] }
 0x111   : > { %v1650_v40 = vpack.c.bf16 %v674_v29, %v670_v28  ;;  %v1524_v43 = vpack.c.bf16 %v681_v31, %v677_v30  ;;  %v682_v46 = vld [vmem:[#allocation3 + $0x670] sm:$0xff] }
 0x112   : > { %822 = vmatprep.mubr.f32.mxu0 %v734_v55  ;;  %964 = vmatprep.mubr.f32.mxu1 %v734_v55  ;;  %v736_v7 = vmax.f32 %v474_v3, 0.0  ;;  %v1636_v55 = vpack.c.bf16 %v651_v48, %v647_v47  ;;  %v685_v47 = vld [vmem:[#allocation3 + $0x688] sm:$0xff]  ;;  %v710_v30 = vld [vmem:[#allocation3 + $0x750] sm:$0xff] }
 0x113   : > { %823 = vmatmul.mubr.f32.vlgmr.msra.gmra.mrb[2].mxu0 %v733_v61  ;;  %965 = vmatmul.mubr.f32.vlgmr.msra.gmra.mrb[2].mxu1 %v733_v61  ;;  %v659_v61 = vld [vmem:[#allocation3 + $0x5b8] sm:$0xff]  ;;  %v689_v48 = vld [vmem:[#allocation3 + $0x6a8] sm:$0xff]  ;;  %v714_v31 = vld [vmem:[#allocation3 + $0x770] sm:$0xff] }
 0x114   : > { %1491 = vmatpush1.bf16.msra.mxu0 %v1490_v56  ;;  %1619 = vmatpush1.bf16.msra.mxu1 %v1618_v57  ;;  %v646_v56 = vld [vmem:[#allocation3 + $0x550] sm:$0xff]  ;;  %v1640_v3 = vpack.c.bf16 %v659_v61, %v655_v60  ;;  %v693_v60 = vld [vmem:[#allocation3 + $0x6c8] sm:$0xff] }
 0x115   : > { %1493 = vmatprep.subr.bf16.mxu0 %v1492_v62  ;;  %1621 = vmatprep.subr.bf16.mxu1 %v1620_v63  ;;  %v650_v57 = vld [vmem:[#allocation3 + $0x570] sm:$0xff]  ;;  %v1510_v62 = vpack.c.bf16 %v648_v52, %v644_v51  ;;  %v1654_v52 = vpack.c.bf16 %v682_v46, %v678_v45  ;;  %v697_v61 = vld [vmem:[#allocation3 + $0x6e8] sm:$0xff]  ;;  %v320_v45 = vsub.s32 2, %v1966_v34 }
 0x116   : > { %893 = vmatprep.mubr.f32.mxu0 %v736_v7  ;;  %1035 = vmatprep.mubr.f32.mxu1 %v736_v7  ;;  %v1638_v63 = vpack.c.bf16 %v650_v57, %v646_v56  ;;  %v665_v7 = vld [vmem:[#allocation3 + $0x5e8] sm:$0xff]  ;;  %v1528_v56 = vpack.c.bf16 %v689_v48, %v685_v47  ;;  %v1532_v4 = vpack.c.bf16 %v697_v61, %v693_v60  ;;  %v718_v48 = vld [vmem:[#allocation3 + $0x790] sm:$0xff] }
 0x117   : > { %v1516_v14 = vpack.c.bf16 %v665_v7, %v661_v6  ;;  %v694_v6 = vld [vmem:[#allocation3 + $0x6d0] sm:$0xff]  ;;  %v321_v59 = vrot.slane %v1972_v36, %v320_v45  ;;  %v1091_v36 = vld [vmem:[%s2208_s5 + $0x188] sm:$0xff] }
 0x118   : > { %1495 = vmatpush1.bf16.msra.mxu0 %v1494_v8  ;;  %1623 = vmatpush1.bf16.msra.mxu1 %v1622_v9  ;;  %v663_v8 = vld [vmem:[#allocation3 + $0x5d8] sm:$0xff]  ;;  %v698_v7 = vld [vmem:[#allocation3 + $0x6f0] sm:$0xff] }
 0x119   : > { %1497 = vmatprep.subr.bf16.mxu0 %v1496_v12  ;;  %1625 = vmatprep.subr.bf16.mxu1 %v1624_v13  ;;  %v667_v9 = vld [vmem:[#allocation3 + $0x5f8] sm:$0xff]  ;;  %v660_v12 = vld [vmem:[#allocation3 + $0x5c0] sm:$0xff] }
 0x11a   : > { %v664_v13 = vld [vmem:[#allocation3 + $0x5e0] sm:$0xff]  ;;  %v1644_v15 = vpack.c.bf16 %v667_v9, %v663_v8  ;;  %v701_v8 = vld [vmem:[#allocation3 + $0x708] sm:$0xff] }
 0x11b   : > { %v1518_v22 = vpack.c.bf16 %v664_v13, %v660_v12  ;;  %v705_v9 = vld [vmem:[#allocation3 + $0x728] sm:$0xff]  ;;  %v1662_v13 = vpack.c.bf16 %v698_v7, %v694_v6  ;;  %v472_v7 = vadd.f32 %v1985_v54, %v321_v59  ;;  %v1061_v54 = vld [vmem:[%s2208_s5 + $0x98] sm:$0xff] }
 0x11c   : > { %1499 = vmatpush1.bf16.msra.mxu0 %v1498_v20  ;;  %1627 = vmatpush1.bf16.msra.mxu1 %v1626_v21  ;;  %v671_v20 = vld [vmem:[#allocation3 + $0x618] sm:$0xff]  ;;  %v1536_v16 = vpack.c.bf16 %v705_v9, %v701_v8  ;;  %v1043_v6 = vld [vmem:[%s2208_s5 + $0x8] sm:$0xff] }
 0x11d   : > { %1501 = vmatprep.subr.bf16.mxu0 %v1500_v24  ;;  %1629 = vmatprep.subr.bf16.mxu1 %v1628_v25  ;;  %v675_v21 = vld [vmem:[#allocation3 + $0x638] sm:$0xff]  ;;  %v668_v24 = vld [vmem:[#allocation3 + $0x600] sm:$0xff] }
 0x11e   : > { %v672_v25 = vld [vmem:[#allocation3 + $0x620] sm:$0xff]  ;;  %v1648_v27 = vpack.c.bf16 %v675_v21, %v671_v20  ;;  %v709_v20 = vld [vmem:[#allocation3 + $0x748] sm:$0xff] }
 0x11f   : > { %v1522_v38 = vpack.c.bf16 %v672_v25, %v668_v24  ;;  %v713_v21 = vld [vmem:[#allocation3 + $0x768] sm:$0xff]  ;;  %v1666_v25 = vpack.c.bf16 %v706_v19, %v702_v18  ;;  %v1045_v18 = vld [vmem:[%s2208_s5 + $0x18] sm:$0xff]  ;;  %v735_v19 = vmax.f32 %v472_v7, 0.0 }
 0x120   : > { %1503 = vmatpush1.bf16.msra.mxu0 %v1502_v32  ;;  %1631 = vmatpush1.bf16.msra.mxu1 %v1630_v33  ;;  %v679_v32 = vld [vmem:[#allocation3 + $0x658] sm:$0xff]  ;;  %v1540_v28 = vpack.c.bf16 %v713_v21, %v709_v20 }
 0x121   : > { %1505 = vmatprep.subr.bf16.mxu0 %v1504_v41  ;;  %1633 = vmatprep.subr.bf16.mxu1 %v1632_v42  ;;  %v683_v33 = vld [vmem:[#allocation3 + $0x678] sm:$0xff]  ;;  %v676_v41 = vld [vmem:[#allocation3 + $0x640] sm:$0xff] }
 0x122   : > { %v680_v42 = vld [vmem:[#allocation3 + $0x660] sm:$0xff]  ;;  %v1652_v44 = vpack.c.bf16 %v683_v33, %v679_v32  ;;  %v717_v32 = vld [vmem:[#allocation3 + $0x788] sm:$0xff] }
 0x123   : > { %v1526_v51 = vpack.c.bf16 %v680_v42, %v676_v41  ;;  %v721_v33 = vld [vmem:[#allocation3 + $0x7a8] sm:$0xff]  ;;  %v1670_v42 = vpack.c.bf16 %v714_v31, %v710_v30  ;;  %v1046_v30 = vld [vmem:[%s2208_s5 + $0x20] sm:$0xff] }
 0x124   : > { %1507 = vmatpush1.bf16.msra.mxu0 %v1506_v49  ;;  %1635 = vmatpush1.bf16.msra.mxu1 %v1634_v50  ;;  %v687_v49 = vld [vmem:[#allocation3 + $0x698] sm:$0xff]  ;;  %v1544_v46 = vpack.c.bf16 %v721_v33, %v717_v32  ;;  %v1047_v31 = vld [vmem:[%s2208_s5 + $0x28] sm:$0xff] }
 0x125   : > { %1509 = vmatprep.subr.bf16.mxu0 %v1508_v53  ;;  %1637 = vmatprep.subr.bf16.mxu1 %v1636_v55  ;;  %v691_v50 = vld [vmem:[#allocation3 + $0x6b8] sm:$0xff]  ;;  %v684_v53 = vld [vmem:[#allocation3 + $0x680] sm:$0xff] }
 0x126   : > { %v688_v55 = vld [vmem:[#allocation3 + $0x6a0] sm:$0xff]  ;;  %v1656_v57 = vpack.c.bf16 %v691_v50, %v687_v49  ;;  %v722_v49 = vld [vmem:[#allocation3 + $0x7b0] sm:$0xff]  ;;  %v725_v50 = vld [vmem:[#allocation3 + $0x7c8] sm:$0xff] }
 0x127   : > { %v1530_v0 = vpack.c.bf16 %v688_v55, %v684_v53  ;;  %v731_v53 = vld [vmem:[#allocation3 + $0x7f8] sm:$0xff] }
 0x128   : > { %1511 = vmatpush1.bf16.msra.mxu0 %v1510_v62  ;;  %1639 = vmatpush1.bf16.msra.mxu1 %v1638_v63  ;;  %v695_v62 = vld [vmem:[#allocation3 + $0x6d8] sm:$0xff] }
 0x129   : > { %1513 = vmatprep.subr.bf16.mxu0 %v1512_v2  ;;  %1641 = vmatprep.subr.bf16.mxu1 %v1640_v3  ;;  %v699_v63 = vld [vmem:[#allocation3 + $0x6f8] sm:$0xff]  ;;  %v692_v2 = vld [vmem:[#allocation3 + $0x6c0] sm:$0xff] }
 0x12a   : > { %v696_v3 = vld [vmem:[#allocation3 + $0x6e0] sm:$0xff]  ;;  %v1660_v5 = vpack.c.bf16 %v699_v63, %v695_v62  ;;  %v726_v62 = vld [vmem:[#allocation3 + $0x7d0] sm:$0xff] }
 0x12b   : > { %v1534_v12 = vpack.c.bf16 %v696_v3, %v692_v2  ;;  %v730_v63 = vld [vmem:[#allocation3 + $0x7f0] sm:$0xff]  ;;  %v1090_v2 = vld [vmem:[%s2208_s5 + $0x180] sm:$0xff] }
 0x12c   : > { %1515 = vmatpush1.bf16.msra.mxu0 %v1514_v10  ;;  %1643 = vmatpush1.bf16.msra.mxu1 %v1642_v11  ;;  %v703_v10 = vld [vmem:[#allocation3 + $0x718] sm:$0xff]  ;;  %v1712_v9 = vpack.c.bf16 %v1091_v36, %v1090_v2  ;;  %v1083_v2 = vld [vmem:[%s2208_s5 + $0x148] sm:$0xff]  ;;  %v1068_v36 = vld [vmem:[%s2208_s5 + $0xd0] sm:$0xff] }
 0x12d   : > { %1517 = vmatprep.subr.bf16.mxu0 %v1516_v14  ;;  %1645 = vmatprep.subr.bf16.mxu1 %v1644_v15  ;;  %v707_v11 = vld [vmem:[#allocation3 + $0x738] sm:$0xff]  ;;  %v700_v14 = vld [vmem:[#allocation3 + $0x700] sm:$0xff] }
 0x12e   : > { %v704_v15 = vld [vmem:[#allocation3 + $0x720] sm:$0xff]  ;;  %v1664_v17 = vpack.c.bf16 %v707_v11, %v703_v10 }
 0x12f   : > { %v1538_v24 = vpack.c.bf16 %v704_v15, %v700_v14  ;;  %v1074_v10 = vld [vmem:[%s2208_s5 + $0x100] sm:$0xff]  ;;  %v1075_v11 = vld [vmem:[%s2208_s5 + $0x108] sm:$0xff]  ;;  %v1093_v14 = vld [vmem:[%s2208_s5 + $0x198] sm:$0xff] }
 0x130   : > { %1519 = vmatpush1.bf16.msra.mxu0 %v1518_v22  ;;  %1647 = vmatpush1.bf16.msra.mxu1 %v1646_v23  ;;  %v711_v22 = vld [vmem:[#allocation3 + $0x758] sm:$0xff] }
 0x131   : > { %1521 = vmatprep.subr.bf16.mxu0 %v1520_v26  ;;  %1649 = vmatprep.subr.bf16.mxu1 %v1648_v27  ;;  %v715_v23 = vld [vmem:[#allocation3 + $0x778] sm:$0xff]  ;;  %v708_v26 = vld [vmem:[#allocation3 + $0x740] sm:$0xff] }
 0x132   : > { %v712_v27 = vld [vmem:[#allocation3 + $0x760] sm:$0xff]  ;;  %v1668_v29 = vpack.c.bf16 %v715_v23, %v711_v22  ;;  %v1076_v22 = vld [vmem:[%s2208_s5 + $0x110] sm:$0xff]  ;;  %v1077_v23 = vld [vmem:[%s2208_s5 + $0x118] sm:$0xff] }
 0x133   : > { %v1542_v41 = vpack.c.bf16 %v712_v27, %v708_v26  ;;  %v1094_v26 = vld [vmem:[%s2208_s5 + $0x1a0] sm:$0xff]  ;;  %v1095_v27 = vld [vmem:[%s2208_s5 + $0x1a8] sm:$0xff] }
 0x134   : > { %1523 = vmatpush1.bf16.msra.mxu0 %v1522_v38  ;;  %1651 = vmatpush1.bf16.msra.mxu1 %v1650_v40  ;;  %v719_v38 = vld [vmem:[#allocation3 + $0x798] sm:$0xff]  ;;  %v1720_v33 = vpack.c.bf16 %v1095_v27, %v1094_v26  ;;  %v1072_v27 = vld [vmem:[%s2208_s5 + $0xf0] sm:$0xff] }
 0x135   : > { %1525 = vmatprep.subr.bf16.mxu0 %v1524_v43  ;;  %1653 = vmatprep.subr.bf16.mxu1 %v1652_v44  ;;  %v723_v40 = vld [vmem:[#allocation3 + $0x7b8] sm:$0xff]  ;;  %v716_v43 = vld [vmem:[#allocation3 + $0x780] sm:$0xff] }
 0x136   : > { %v720_v44 = vld [vmem:[#allocation3 + $0x7a0] sm:$0xff]  ;;  %v1672_v47 = vpack.c.bf16 %v723_v40, %v719_v38 }
 0x137   : > { %v1546_v55 = vpack.c.bf16 %v720_v44, %v716_v43  ;;  %v1078_v38 = vld [vmem:[%s2208_s5 + $0x120] sm:$0xff]  ;;  %v1079_v40 = vld [vmem:[%s2208_s5 + $0x128] sm:$0xff]  ;;  %v1096_v43 = vld [vmem:[%s2208_s5 + $0x1b0] sm:$0xff] }
 0x138   : > { %1527 = vmatpush1.bf16.msra.mxu0 %v1526_v51  ;;  %1655 = vmatpush1.bf16.msra.mxu1 %v1654_v52  ;;  %v729_v51 = vld [vmem:[#allocation3 + $0x7e8] sm:$0xff]  ;;  %v727_v52 = vld [vmem:[#allocation3 + $0x7d8] sm:$0xff] }
 0x139   : > { %1529 = vmatprep.subr.bf16.mxu0 %v1528_v56  ;;  %1657 = vmatprep.subr.bf16.mxu1 %v1656_v57  ;;  %v1674_v56 = vpack.c.bf16 %v722_v49, %v718_v48  ;;  %v724_v57 = vld [vmem:[#allocation3 + $0x7c0] sm:$0xff]  ;;  %v1548_v60 = vpack.c.bf16 %v729_v51, %v725_v50  ;;  %v1676_v61 = vpack.c.bf16 %v731_v53, %v727_v52  ;;  %v1097_v44 = vld [vmem:[%s2208_s5 + $0x1b8] sm:$0xff]  ;;  %v1048_v48 = vld [vmem:[%s2208_s5 + $0x30] sm:$0xff] }
 0x13a   : > { %v1550_v3 = vpack.c.bf16 %v728_v58, %v724_v57  ;;  %v1049_v49 = vld [vmem:[%s2208_s5 + $0x38] sm:$0xff]  ;;  %v1724_v51 = vpack.c.bf16 %v1097_v44, %v1096_v43  ;;  %v1080_v52 = vld [vmem:[%s2208_s5 + $0x130] sm:$0xff]  ;;  %v1098_v57 = vld [vmem:[%s2208_s5 + $0x1c0] sm:$0xff] }
 0x13b   : > { %v1081_v53 = vld [vmem:[%s2208_s5 + $0x138] sm:$0xff]  ;;  %v1099_v58 = vld [vmem:[%s2208_s5 + $0x1c8] sm:$0xff]  ;;  %v1694_v59 = vpack.c.bf16 %v1049_v49, %v1048_v48  ;;  %v732_v44 = vld [vmem:[%s2207_s4] sm:$0xf] }
 0x13c   : > { %1531 = vmatpush1.bf16.msra.mxu0 %v1530_v0  ;;  %1659 = vmatpush1.bf16.msra.mxu1 %v1658_v1  ;;  %v1058_v0 = vld [vmem:[%s2208_s5 + $0x80] sm:$0xff]  ;;  %v1059_v1 = vld [vmem:[%s2208_s5 + $0x88] sm:$0xff]  ;;  %v745_v48 = vrot.slane %v732_v44, %v316_v37  ;;  %v753_v49 = vrot.slane %v732_v44, %v324_v39 }
 0x13d   : > { %1533 = vmatprep.subr.bf16.mxu0 %v1532_v4  ;;  %1661 = vmatprep.subr.bf16.mxu1 %v1660_v5  ;;  %v1678_v4 = vpack.c.bf16 %v730_v63, %v726_v62  ;;  %v1042_v5 = vld [vmem:[%s2208_s5] sm:$0xff]  ;;  %v1680_v8 = vpack.c.bf16 %v1059_v1, %v1058_v0  ;;  %v1051_v62 = vld [vmem:[%s2208_s5 + $0x48] sm:$0xff]  ;;  %v1728_v0 = vpack.c.bf16 %v1099_v58, %v1098_v57 }
 0x13e   : > { %v1682_v15 = vpack.c.bf16 %v1043_v6, %v1042_v5  ;;  %v1082_v1 = vld [vmem:[%s2208_s5 + $0x140] sm:$0xff]  ;;  %v1101_v5 = vld [vmem:[%s2208_s5 + $0x1d8] sm:$0xff] }
 0x13f   : > { %v1730_v7 = vpack.c.bf16 %v1083_v2, %v1082_v1  ;;  %v1335_v39 = vld [vmem:[#allocation2] ss:$0 sm:$0xff] }
 0x140   : > { %1535 = vmatpush1.bf16.msra.mxu0 %v1534_v12  ;;  %1663 = vmatpush1.bf16.msra.mxu1 %v1662_v13  ;;  %v1060_v12 = vld [vmem:[%s2208_s5 + $0x90] sm:$0xff] }
 0x141   : > { %1537 = vmatprep.subr.bf16.mxu0 %v1536_v16  ;;  %1665 = vmatprep.subr.bf16.mxu1 %v1664_v17  ;;  %v1092_v13 = vld [vmem:[%s2208_s5 + $0x190] sm:$0xff]  ;;  %v1714_v16 = vpack.c.bf16 %v1075_v11, %v1074_v10  ;;  %v1684_v20 = vpack.c.bf16 %v1061_v54, %v1060_v12  ;;  %v1085_v54 = vld [vmem:[%s2208_s5 + $0x158] sm:$0xff] }
 0x142   : > { %v1044_v17 = vld [vmem:[%s2208_s5 + $0x10] sm:$0xff]  ;;  %v1716_v21 = vpack.c.bf16 %v1093_v14, %v1092_v13  ;;  %v1070_v13 = vld [vmem:[%s2208_s5 + $0xe0] sm:$0xff]  ;;  %v1071_v14 = vld [vmem:[%s2208_s5 + $0xe8] sm:$0xff] }
 0x143   : > { %v1084_v12 = vld [vmem:[%s2208_s5 + $0x150] sm:$0xff] }
 0x144   : > { %1539 = vmatpush1.bf16.msra.mxu0 %v1538_v24  ;;  %1667 = vmatpush1.bf16.msra.mxu1 %v1666_v25  ;;  %v1062_v24 = vld [vmem:[%s2208_s5 + $0xa0] sm:$0xff]  ;;  %v1063_v25 = vld [vmem:[%s2208_s5 + $0xa8] sm:$0xff] }
 0x145   : > { %1541 = vmatprep.subr.bf16.mxu0 %v1540_v28  ;;  %1669 = vmatprep.subr.bf16.mxu1 %v1668_v29  ;;  %v1686_v28 = vpack.c.bf16 %v1045_v18, %v1044_v17  ;;  %v1718_v29 = vpack.c.bf16 %v1077_v23, %v1076_v22  ;;  %v1688_v32 = vpack.c.bf16 %v1063_v25, %v1062_v24  ;;  %v1055_v22 = vld [vmem:[%s2208_s5 + $0x68] sm:$0xff]  ;;  %v1086_v23 = vld [vmem:[%s2208_s5 + $0x160] sm:$0xff] }
 0x146   : > { %v1734_v18 = vpack.c.bf16 %v1085_v54, %v1084_v12  ;;  %v1087_v25 = vld [vmem:[%s2208_s5 + $0x168] sm:$0xff] }
 0x147   : > { %v1738_v26 = vpack.c.bf16 %v1087_v25, %v1086_v23 }
 0x148   : > { %1543 = vmatpush1.bf16.msra.mxu0 %v1542_v41  ;;  %1671 = vmatpush1.bf16.msra.mxu1 %v1670_v42  ;;  %v1064_v41 = vld [vmem:[%s2208_s5 + $0xb0] sm:$0xff]  ;;  %v1065_v42 = vld [vmem:[%s2208_s5 + $0xb8] sm:$0xff] }
 0x149   : > { %1545 = vmatprep.subr.bf16.mxu0 %v1544_v46  ;;  %1673 = vmatprep.subr.bf16.mxu1 %v1672_v47  ;;  %v1690_v46 = vpack.c.bf16 %v1047_v31, %v1046_v30  ;;  %v1722_v47 = vpack.c.bf16 %v1079_v40, %v1078_v38  ;;  %v1692_v50 = vpack.c.bf16 %v1065_v42, %v1064_v41  ;;  %v1105_v31 = vld [vmem:[%s2208_s5 + $0x1f8] sm:$0xff]  ;;  %v1088_v41 = vld [vmem:[%s2208_s5 + $0x170] sm:$0xff] }
 0x14a   : > { %v1089_v42 = vld [vmem:[%s2208_s5 + $0x178] sm:$0xff] }
 0x14b   : > { %v1742_v43 = vpack.c.bf16 %v1089_v42, %v1088_v41 }
 0x14c   : > { %1547 = vmatpush1.bf16.msra.mxu0 %v1546_v55  ;;  %1675 = vmatpush1.bf16.msra.mxu1 %v1674_v56  ;;  %v1066_v55 = vld [vmem:[%s2208_s5 + $0xc0] sm:$0xff]  ;;  %v1067_v56 = vld [vmem:[%s2208_s5 + $0xc8] sm:$0xff] }
 0x14d   : > { %1549 = vmatprep.subr.bf16.mxu0 %v1548_v60  ;;  %1677 = vmatprep.subr.bf16.mxu1 %v1676_v61  ;;  %v1726_v60 = vpack.c.bf16 %v1081_v53, %v1080_v52  ;;  %v1050_v61 = vld [vmem:[%s2208_s5 + $0x40] sm:$0xff]  ;;  %v1696_v63 = vpack.c.bf16 %v1067_v56, %v1066_v55 }
 0x14e   : > { %v1698_v6 = vpack.c.bf16 %v1051_v62, %v1050_v61 }
 0x150   : > { %1551 = vmatpush1.bf16.msra.mxu0 %v1550_v3  ;;  %1679 = vmatpush1.bf16.msra.mxu1 %v1678_v4  ;;  %v1069_v3 = vld [vmem:[%s2208_s5 + $0xd8] sm:$0xff]  ;;  %v1100_v4 = vld [vmem:[%s2208_s5 + $0x1d0] sm:$0xff] }
 0x151   : > { %1681 = vmatprep.subr.bf16.mxu0 %v1680_v8  ;;  %1713 = vmatprep.subr.bf16.mxu1 %v1712_v9  ;;  %v1052_v8 = vld [vmem:[%s2208_s5 + $0x50] sm:$0xff]  ;;  %v1053_v9 = vld [vmem:[%s2208_s5 + $0x58] sm:$0xff]  ;;  %v1700_v10 = vpack.c.bf16 %v1069_v3, %v1068_v36  ;;  %v1732_v11 = vpack.c.bf16 %v1101_v5, %v1100_v4 }
 0x152   : > { %v1702_v17 = vpack.c.bf16 %v1053_v9, %v1052_v8 }
 0x153   : > { %894 = vmatmul.mubr.f32.vlgmr.msra.gmra.mrb[2].mxu0 %v735_v19  ;;  %1036 = vmatmul.mubr.f32.vlgmr.msra.gmra.mrb[2].mxu1 %v735_v19  ;;  %v1704_v19 = vpack.c.bf16 %v1071_v14, %v1070_v13 }
 0x154   : > { %1683 = vmatpush3.bf16.msra.mxu0 %v1682_v15  ;;  %1715 = vmatpush3.bf16.msra.mxu1 %v1714_v16  ;;  %v1102_v15 = vld [vmem:[%s2208_s5 + $0x1e0] sm:$0xff]  ;;  %v1103_v16 = vld [vmem:[%s2208_s5 + $0x1e8] sm:$0xff] }
 0x155   : > { %1685 = vmatprep.subr.bf16.mxu0 %v1684_v20  ;;  %1717 = vmatprep.subr.bf16.mxu1 %v1716_v21  ;;  %v1736_v20 = vpack.c.bf16 %v1103_v16, %v1102_v15  ;;  %v1054_v21 = vld [vmem:[%s2208_s5 + $0x60] sm:$0xff] }
 0x156   : > { %v1706_v24 = vpack.c.bf16 %v1055_v22, %v1054_v21 }
 0x158   : > { %1687 = vmatpush3.bf16.msra.mxu0 %v1686_v28  ;;  %1719 = vmatpush3.bf16.msra.mxu1 %v1718_v29  ;;  %v1073_v28 = vld [vmem:[%s2208_s5 + $0xf8] sm:$0xff]  ;;  %v1104_v29 = vld [vmem:[%s2208_s5 + $0x1f0] sm:$0xff] }
 0x159   : > { %1689 = vmatprep.subr.bf16.mxu0 %v1688_v32  ;;  %1721 = vmatprep.subr.bf16.mxu1 %v1720_v33  ;;  %v1708_v30 = vpack.c.bf16 %v1073_v28, %v1072_v27  ;;  %v1056_v32 = vld [vmem:[%s2208_s5 + $0x70] sm:$0xff]  ;;  %v1057_v33 = vld [vmem:[%s2208_s5 + $0x78] sm:$0xff]  ;;  %v1740_v38 = vpack.c.bf16 %v1105_v31, %v1104_v29 }
 0x15a   : > { %v1710_v40 = vpack.c.bf16 %v1057_v33, %v1056_v32 }
 0x15c   : > { %1691 = vmatpush3.bf16.msra.mxu0 %v1690_v46  ;;  %1723 = vmatpush3.bf16.msra.mxu1 %v1722_v47  ;;  %v741_v46 = vrot.slane %v732_v44, %v312_v35  ;;  %v749_v47 = vrot.slane %v732_v44, %v320_v45 }
 0x15d   : > { %1693 = vmatprep.subr.bf16.mxu0 %v1692_v50  ;;  %1725 = vmatprep.subr.bf16.mxu1 %v1724_v51 }
 0x160   : > { %1695 = vmatpush3.bf16.msra.mxu0 %v1694_v59  ;;  %1727 = vmatpush3.bf16.msra.mxu1 %v1726_v60 }
 0x161   : > { %1697 = vmatprep.subr.bf16.mxu0 %v1696_v63  ;;  %1729 = vmatprep.subr.bf16.mxu1 %v1728_v0 }
 0x164   : > { %1699 = vmatpush3.bf16.msra.mxu0 %v1698_v6  ;;  %1731 = vmatpush3.bf16.msra.mxu1 %v1730_v7 }
 0x165   : > { %1701 = vmatprep.subr.bf16.mxu0 %v1700_v10  ;;  %1733 = vmatprep.subr.bf16.mxu1 %v1732_v11 }
 0x168   : > { %1703 = vmatpush3.bf16.msra.mxu0 %v1702_v17  ;;  %1735 = vmatpush3.bf16.msra.mxu1 %v1734_v18 }
 0x169   : > { %1705 = vmatprep.subr.bf16.mxu0 %v1704_v19  ;;  %1737 = vmatprep.subr.bf16.mxu1 %v1736_v20 }
 0x16c   : > { %1707 = vmatpush3.bf16.msra.mxu0 %v1706_v24  ;;  %1739 = vmatpush3.bf16.msra.mxu1 %v1738_v26 }
 0x16d   : > { %1709 = vmatprep.subr.bf16.mxu0 %v1708_v30  ;;  %1741 = vmatprep.subr.bf16.mxu1 %v1740_v38 }
 0x170   : > { %1711 = vmatpush3.bf16.msra.mxu0 %v1710_v40  ;;  %1743 = vmatpush3.bf16.msra.mxu1 %v1742_v43 }
 0x226   : > { %v895_v50 = vpop.f32.mrb[2].mxu0  ;;  %v1037_v51 = vpop.f32.mrb[2].mxu1 }
 0x227   : > { %v1744_v52 = vadd.f32 %v895_v50, %v741_v46  ;;  %v1746_v53 = vadd.f32 %v1037_v51, %v749_v47  ;;  %v897_v55 = vpop.f32.mrb[3].mxu0  ;;  %v1039_v56 = vpop.f32.mrb[3].mxu1 }
 0x228   : > { %v1745_v57 = vadd.f32 %v897_v55, %v745_v48  ;;  %v1747_v58 = vadd.f32 %v1039_v56, %v753_v49 }
 0x229   : > { %v1107_v60 = vmax.f32 %v1744_v52, 0.0  ;;  %v1109_v61 = vmax.f32 %v1746_v53, 0.0 }
 0x22a   : > { %v1108_v59 = vmax.f32 %v1745_v57, 0.0  ;;  %v1110_v35 = vmax.f32 %v1747_v58, 0.0 }
 0x22c   : > { %1181 = vmatprep.mubr.f32.mxu0 %v1108_v59  ;;  %1251 = vmatprep.mubr.f32.mxu1 %v1110_v35 }
 0x22d   : > { %1182 = vmatmul.mubr.f32.vlgmr.msra.gmra.mrb[4].mxu0 %v1107_v60  ;;  %1252 = vmatmul.mubr.f32.vlgmr.msra.gmra.mrb[4].mxu1 %v1109_v61 }
 0x300   : > { %v1370_v37 = vpop.f32.mrb[4].mxu0  ;;  %v1405_v34 = vpop.f32.mrb[4].mxu1 }
 0x301   : > { %v1371_v45 = vpop.f32.mrb[5].mxu0  ;;  %v1406_v62 = vpop.f32.mrb[5].mxu1 }
 0x302   : > { %v1372_v63 = vadd.f32 %v1371_v45, %v1370_v37  ;;  %v1407_v0 = vadd.f32 %v1406_v62, %v1405_v34 }
 0x304   : > { %v1184_v1 = vadd.f32 %v1372_v63, %v1335_v39 }
 0x306   : > { %v1254_v2 = vadd.f32 %v1407_v0, %v1184_v1 }
 0x308   : > { %1258 = vst.msk [vmem:[%s290_s21] sm:$0xff] %vm1257_vm1, %v1254_v2 }
 0x309 PF: > { %s20_s26 = sadd.s32 1, %s1812_s26  }
 0x30a   : > { %p17_p3 = scmp.ge.s32.totalorder %s20_s26, 4  }
 0x30c   :  { %19 = sbr.rel (!%p17_p3) target bundleno = 4 (0x4), region = 83 }
 0x313   :  { %1278 = vsyncpa [#allocation4], 1 }
 0x314   :  { %1280 = vsyncpa [#allocation4 + $0x1], 1 }

</bundles_post_ra>
